<compile_context>
chip_gen: v7x
topology: tpu7x:2x2x1
jax: 0.10.0
libtpu: 0.0.40
codegen_flags: <defaults>
</compile_context>

<pallas_src>
import jax
import jax.numpy as jnp
from jax.experimental import pallas as pl
from jax.experimental.pallas import tpu as pltpu


def mlp_kernel(x_ref, w_ref, b_ref, o_ref):
    """Fused eval-mode Dropout -> Linear(units, 1) for one batch tile.

    x_ref: (TB, U) VMEM, streamed batch tile (auto double-buffered).
    w_ref: (1, U)  VMEM, resident weight row (same block every grid step).
    b_ref: (1,)    SMEM, bias scalar.
    o_ref: (1, TB) VMEM, lane-dense output slab for this tile.
    """
    # TODO(synk): nn.Dropout(0.1) is stochastic only in train mode; eval-mode
    # (identity) semantics are implemented here, matching inference forward.
    x = x_ref[...]                      # (TB, U)
    w = w_ref[...]                      # (1, U) -> broadcast over sublanes
    b = b_ref[0]                        # SMEM scalar

    # VPU path (review item 2): elementwise multiply on the VALU, then one
    # cross-lane reduce per 8-row group on the XLU.  No MXU weight-latch /
    # x-tile transpose, so the binding resource is purely the HBM stream of x.
    y = jnp.sum(x * w, axis=1)          # (TB,) f32 row dot-products

    # Cheap result-side relayout only (review item 4): TB values move from
    # sublane-major to lane-major so the store is a single unmasked lane-dense
    # vst; garbage lanes of a partial last block are clipped on writeback.
    o_ref[...] = (y + b).reshape(1, -1).astype(o_ref.dtype)


def _round_up(n, m):
    return (n + m - 1) // m * m


def _pick_batch_tile(batch, units, vmem_tile_bytes=8 << 20):
    """Rows of x per grid step.

    VMEM footprint per x buffer is lane-padded: round_up(units,128) lanes * 4B
    per row, so for units < 128 an "8 MiB" buffer carries only units/128 of
    that in real HBM bytes (review item 5; feature-folding would recover it
    but needs a segmented lane reduce -- not worth the lowering risk here).
    8 MiB per buffer keeps 2 x-buffers + whole-block mul/reduce temporaries +
    2 small output buffers at ~33 MiB: under the 48 MiB scoped limit below and
    under v7x's 64 MiB physical VMEM.  Going to 16 MiB buffers (v7x item)
    would require an in-kernel row-chunk loop to bound the temporaries.
    """
    lanes = max(_round_up(units, 128), 128)
    rows = max((vmem_tile_bytes // (lanes * 4)) // 128 * 128, 128)
    if batch <= rows:
        return batch          # single full-extent block: always a legal shape
    return rows               # multiple of 128: satisfies (8,128) tiling


def mlp_forward(x, w, b):
    """x: (B, U); w: (U, 1); b: (1,) -> logits (B, 1).

    If the caller supplies x in bfloat16 the kernel still accumulates in f32
    (bf16*f32 promotes) and halves the HBM stream; f32 is used in the test.
    """
    batch, units = x.shape
    tb = _pick_batch_tile(batch, units)
    # Review item 1: no padding of x -- cdiv grid, Pallas clips the partial
    # last block.  Garbage rows read past `batch` only feed clipped lanes.
    grid = (pl.cdiv(batch, tb),)

    w_row = w.reshape(1, units)                  # resident across all tiles
    bias = b.reshape(1).astype(jnp.float32)      # -> SMEM scalar

    cost = pl.CostEstimate(
        flops=2 * batch * units,
        transcendentals=0,
        bytes_accessed=4 * (batch * units + units + batch + 1),
    )

    out = pl.pallas_call(
        mlp_kernel,
        out_shape=jax.ShapeDtypeStruct((1, batch), x.dtype),
        grid_spec=pltpu.PrefetchScalarGridSpec(
            num_scalar_prefetch=0,
            grid=grid,
            in_specs=[
                # Streamed batch tiles of x (auto double-buffered pipeline).
                pl.BlockSpec((tb, units), lambda i: (i, 0)),
                # Tiny weight row, same block every step -> stays resident.
                pl.BlockSpec((1, units), lambda i: (0, 0)),
                # Bias as an SMEM scalar: no per-step VMEM DMA for one float.
                pl.BlockSpec(memory_space=pltpu.MemorySpace.SMEM),
            ],
            # Lane-dense output slab: block (1, TB) along the lane axis.
            out_specs=pl.BlockSpec((1, tb), lambda i: (0, i)),
        ),
        compiler_params=pltpu.CompilerParams(
            # Batch tiles are independent.  NOTE (v7x): pltpu.CORE_PARALLEL on
            # this axis would shard tiles across the 2 TensorCores; kept as
            # "parallel" here for guaranteed compatibility on v5e/v6e.
            dimension_semantics=("parallel",),
            # Raise v5e's 16 MiB scoped default; ~33 MiB worst-case usage
            # leaves headroom and stays under v7x's 64 MiB physical VMEM.
            vmem_limit_bytes=48 << 20,
        ),
        cost_estimate=cost,
    )(x, w_row, bias)

    # (1, B) lane-dense slab -> (B, 1) column (contiguous reshape, no pad to
    # strip and no slice needed).
    return out.reshape(batch, 1)


if __name__ == "__main__":
    key = jax.random.PRNGKey(0)

    def make_inputs(k, batch, units):
        kx, kw, kb = jax.random.split(k, 3)
        x = jax.random.normal(kx, (batch, units), dtype=jnp.float32)
        # Deterministic parameter init mimicking nn.Linear(units, 1):
        # U(-1/sqrt(units), 1/sqrt(units)) for both weight and bias.
        bound = 1.0 / (units ** 0.5)
        w = jax.random.uniform(kw, (units, 1), minval=-bound, maxval=bound,
                               dtype=jnp.float32)
        b = jax.random.uniform(kb, (1,), minval=-bound, maxval=bound,
                               dtype=jnp.float32)
        return x, w, b

    # Primary small-shape correctness check (single full-extent block).
    batch, units = 8, 32
    x, w, b = make_inputs(key, batch, units)
    logits = mlp_forward(x, w, b)
    jax.block_until_ready(logits)
    ref = x @ w + b.reshape(1, 1)
    assert logits.shape == (batch, 1)
    assert jnp.allclose(logits, ref, atol=1e-4, rtol=1e-5)

    # Secondary check: multi-tile grid with a partial (clipped) last block,
    # exercising the no-pad cdiv path.  Still tiny (~4 MiB of input).
    batch2, units2 = 33000, 32
    x2, w2, b2 = make_inputs(jax.random.PRNGKey(1), batch2, units2)
    logits2 = mlp_forward(x2, w2, b2)
    jax.block_until_ready(logits2)
    ref2 = x2 @ w2 + b2.reshape(1, 1)
    assert logits2.shape == (batch2, 1)
    assert jnp.allclose(logits2, ref2, atol=1e-4, rtol=1e-5)

    print("KERNEL_OK")
</pallas_src>

<mosaic_0001>
module attributes {stable_mosaic.version = 11 : i64} {
  func.func @mlp_kernel(%arg0: i32, %arg1: memref<8x32xf32, #tpu.memory_space<vmem>>, %arg2: memref<1x32xf32, #tpu.memory_space<vmem>>, %arg3: memref<1xf32, #tpu.memory_space<smem>>, %arg4: memref<1x8xf32, #tpu.memory_space<vmem>>) attributes {dimension_semantics = [#tpu.dimension_semantics<parallel>], iteration_bounds = array<i64: 1>, scalar_prefetch = 0 : i64, scratch_operands = 0 : i64, tpu.core_type = #tpu.core_type<tc>, window_params = [{transform_indices = @transform_0, window_bounds = array<i64: 8, 32>}, {pipeline_mode = #tpu.pipeline_mode<synchronous>, transform_indices = @transform_1, window_bounds = array<i64: 1, 32>}, {transform_indices = @transform_2, window_bounds = array<i64: 1>}, {transform_indices = @transform_3, window_bounds = array<i64: 1, 8>}]} {
    %c0 = arith.constant 0 : index
    %c0_0 = arith.constant 0 : index
    %0 = vector.load %arg1[%c0, %c0_0] : memref<8x32xf32, #tpu.memory_space<vmem>>, vector<8x32xf32>
    %c0_1 = arith.constant 0 : index
    %c0_2 = arith.constant 0 : index
    %1 = vector.load %arg2[%c0_1, %c0_2] : memref<1x32xf32, #tpu.memory_space<vmem>>, vector<1x32xf32>
    %c0_3 = arith.constant 0 : index
    %2 = memref.load %arg3[%c0_3] : memref<1xf32, #tpu.memory_space<smem>>
    %3 = vector.broadcast %1 : vector<1x32xf32> to vector<8x32xf32>
    %4 = arith.mulf %0, %3 : vector<8x32xf32>
    %cst = arith.constant dense<0.000000e+00> : vector<8xf32>
    %5 = vector.multi_reduction <add>, %4, %cst [1] : vector<8x32xf32> to vector<8xf32>
    %6 = vector.broadcast %2 : f32 to vector<8xf32>
    %7 = arith.addf %5, %6 : vector<8xf32>
    %8 = vector.shape_cast %7 : vector<8xf32> to vector<1x8xf32>
    %c0_4 = arith.constant 0 : index
    %c0_5 = arith.constant 0 : index
    %9 = vector.load %arg4[%c0_4, %c0_5] : memref<1x8xf32, #tpu.memory_space<vmem>>, vector<1x8xf32>
    tpu.vector_store %arg4[%c0_4, %c0_5], %8 {strides = array<i32>} : memref<1x8xf32, #tpu.memory_space<vmem>>, vector<1x8xf32>,
    return
  }
  func.func @transform_0(%arg0: i32) -> (i32, i32) {
    %c0_i32 = arith.constant 0 : i32
    %c0_i32_0 = arith.constant 0 : i32
    return %arg0, %c0_i32 : i32, i32
  }
  func.func @transform_1(%arg0: i32) -> (i32, i32) {
    %c0_i32 = arith.constant 0 : i32
    %c0_i32_0 = arith.constant 0 : i32
    %c0_i32_1 = arith.constant 0 : i32
    return %c0_i32, %c0_i32_0 : i32, i32
  }
  func.func @transform_2(%arg0: i32) -> i32 {
    %c0_i32 = arith.constant 0 : i32
    %c0_i32_0 = arith.constant 0 : i32
    return %c0_i32 : i32
  }
  func.func @transform_3(%arg0: i32) -> (i32, i32) {
    %c0_i32 = arith.constant 0 : i32
    %c0_i32_0 = arith.constant 0 : i32
    return %c0_i32, %arg0 : i32, i32
  }
}

</mosaic_0001>

<bundles_post_ra>
// kernel: tpu_custom_call.1
= control target key start
LH: loop header
LB: loop body
LE: loop exit
PB: predicated region body
PF: predicated region fallthrough
CT: control target
= control target key end

     0   :  { %9 = vsyncpa [#allocation4], 0  ;;  %s172_s0 = inlined_call_operand.hbm [shape: f32[8,32], index: 0, kind: input, shape index: {}]   ;;  %s173_s1 = inlined_call_operand.vmem [shape: f32[1,32], index: 1, kind: input, shape index: {}]   ;;  %s174_s2 = inlined_call_operand.<no memory space> [shape: f32[1], index: 2, kind: input, shape index: {}]   ;;  %s175_s3 = inlined_call_operand.hbm [shape: f32[1,8], index: 3, kind: output, shape index: {}]  }
   0x1   :  { %10 = vsyncpa [#allocation5], 0  ;;  %s120_s12 = smov [#allocation3]   ;;  %s72_s16 = scalar_lea.hbm %s172_s0, 128 }
   0x2   :  { %s17_s13 = sshll.u32 %s120_s12, 4  ;;  %p73_p0 = scmp.ne.s32.totalorder %s172_s0, %s72_s16  ;;  %s18_s13 = int_to_ptr.vmem [resolvable:$true] %s17_s13 }
   0x3   :  { %p76_p1 = scmp.lt.u32.totalorder %s72_s16, %s172_s0 }
   0x5   :  { %p78_p2 = pnand %p76_p1, %p73_p0 }
   0x7   :  { %81 = shalt.err (!%p78_p2)
}
   0x8   :  { %s82_s21 = scalar_lea.vmem %s18_s13, 128  ;;  %p87_p4 = scmp.lt.s32.totalorder %s18_s13, %s18_s13 }
   0x9   :  { %p83_p3 = scmp.ne.s32.totalorder %s18_s13, %s82_s21  ;;  %p88_p5 = scmp.lt.s32.totalorder %s82_s21, %s82_s21 }
   0xb   :  { %p89_p6 = por %p88_p5, %p87_p4 }
   0xd   :  { %p90_p7 = pnand %p89_p6, %p83_p3 }
   0xf   :  { %93 = shalt.err (!%p90_p7)
}
  0x10   :  { %20 = dma.hbm_to_vmem [thread:$0]  %s172_s0, 128, %s18_s13, [#allocation4]  }
  0x11   :  { %116 = dma.done.wait [#allocation4], 128  }
  0x12   :  { %117 = vsyncadd [#allocation4], 4294967168  ;;  %v28_v0 = vld [vmem:[#allocation3] sm:$0xff]  ;;  %vm38_vm0 = vcmask 261120   ;;  %v45_v4 = vlaneseq  ;;  %v42_v7 = vstv %s174_s2  ;;  %s121_s0 = smov [#allocation6]   ;;  %vm52_vm1 = vcmask 57344  }
  0x13   :  { %v69_v1 = vld [vmem:[%s173_s1] ss:$0 sm:$0xff]  ;;  %s60_s28 = sshll.u32 %s121_s0, 4  ;;  %s61_s28 = int_to_ptr.vmem [resolvable:$true] %s60_s28 }
  0x14   :  { %v37_v2 = vmul.f32 %v69_v1, %v28_v0  ;;  %v46_v5 = vand.u32 127, %v45_v4  ;;  %v48_v6 = vshrl.u32 %v45_v4, 7  ;;  %s94_s1 = scalar_lea.vmem %s61_s28, 16  ;;  %s98_s29 = scalar_lea.vmem %s61_s28, 32 }
  0x15   :  { %p95_p8 = scmp.ne.s32.totalorder %s61_s28, %s94_s1  ;;  %p99_p9 = scmp.lt.s32.totalorder %s61_s28, %s61_s28 }
  0x16   :  { %v39_v3 = vsel %vm38_vm0, %v37_v2, 0.0  ;;  %v49_v8 = vsub.s32 %v46_v5, %v48_v6  ;;  %p100_p10 = scmp.lt.s32.totalorder %s98_s29, %s94_s1 }
  0x17   :  { %40 = vadd.xlane.f32.xlu0 %v39_v3 }
  0x18   :  { %p101_p11 = por %p100_p10, %p99_p9 }
  0x1a   :  { %p102_p12 = pnand %p101_p11, %p95_p8 }
  0xa4   :  { %v41_v9 = vpop.xlane.xlu0 %40 }
  0xa5   :  { %v43_v10 = vadd.f32 %v42_v7, %v41_v9 }
  0xa7   :  { %v50_v11 = vrot.slane %v43_v10, %v49_v8 }
  0xa9   :  { %53 = vst.msk [vmem:[#allocation6] sm:$0x1] %vm52_vm1, %v50_v11 }
  0xaa   :  { %105 = shalt.err (!%p102_p12)
}
  0xab   :  { %s106_s2 = scalar_lea.hbm %s175_s3, 16 }
  0xac   :  { %p107_p13 = scmp.ne.s32.totalorder %s175_s3, %s106_s2  ;;  %p110_p0 = scmp.lt.u32.totalorder %s106_s2, %s175_s3 }
  0xae   :  { %p112_p1 = pnand %p110_p0, %p107_p13 }
  0xb0   :  { %115 = shalt.err (!%p112_p1)
}
  0xb1   :  { %63 = dma.vmem_to_hbm [thread:$0]  %s61_s28, 16, %s175_s3, [#allocation5]  }
  0xb2   :  { %118 = dma.done.wait [#allocation5], 16  }
  0xb3   :  { %119 = vsyncadd [#allocation5], 4294967280 }
  0xb4   :  { %67 = vsyncpa [#allocation4], 1 }
  0xb5   :  { %68 = vsyncpa [#allocation5], 1 }

</bundles_post_ra>
